<compile_context>
chip_gen: v6e
topology: v6e:2x2x1
jax: 0.10.0
libtpu: 0.0.40
codegen_flags: <defaults>
</compile_context>

<pallas_src>
import functools
import math

import jax
import jax.numpy as jnp
from jax.experimental import pallas as pl
from jax.experimental.pallas import tpu as pltpu


def _vmem_limit_bytes():
    try:
        cap = pltpu.get_tpu_info().vmem_capacity_bytes
        return int(cap * 3 // 4)        # ~96 MiB on v5e/v6e, ~48 MiB on v7x
    except Exception:
        return 64 * 1024 * 1024         # safe fallback (fits every generation)


VMEM_LIMIT_BYTES = _vmem_limit_bytes()

# preferred tile sizes (shrunk automatically for small / toy shapes)
TM_PREF = 512
TN_PREF = 512
TQ_PREF = 512
TKV_PREF = 256


def _pick_tile(dim, pref, align):
    """Largest tile <= pref that divides dim and respects `align`; else full dim."""
    if dim <= pref:
        return dim
    t = (pref // align) * align
    while t >= align:
        if dim % t == 0:
            return t
        t -= align
    return dim


# ---------------- single-shot tiled matmul (+bias, +GELU, +residual+LN) ----------------

def _mm_kernel(*refs, activation, fuse_ln, eps):
    if fuse_ln:
        x_ref, w_ref, b_ref, r_ref, g_ref, be_ref, o_ref = refs
    else:
        x_ref, w_ref, b_ref, o_ref = refs

    acc = jnp.dot(x_ref[...], w_ref[...], preferred_element_type=jnp.float32)
    acc = acc + b_ref[...].astype(jnp.float32)

    if activation == "gelu":
        # TODO(synk): XLM-R uses erf-GELU; tanh approximation (EUP path) has
        # small (~1e-3) numeric drift vs the PyTorch reference.
        c = math.sqrt(2.0 / math.pi)
        acc = 0.5 * acc * (1.0 + jnp.tanh(c * (acc + 0.044715 * acc * acc * acc)))

    if fuse_ln:
        h = acc + r_ref[...].astype(jnp.float32)
        # one-pass LayerNorm statistics: var = E[x^2] - mu^2
        mu = jnp.mean(h, axis=-1, keepdims=True)
        ms = jnp.mean(h * h, axis=-1, keepdims=True)
        acc = (h - mu) * jax.lax.rsqrt(ms - mu * mu + eps)
        acc = (acc * g_ref[...].astype(jnp.float32)
               + be_ref[...].astype(jnp.float32))

    o_ref[...] = acc.astype(o_ref.dtype)


def fused_matmul(x, w, b, *, activation=None, residual=None,
                 ln_gamma=None, ln_beta=None, eps=1e-5,
                 out_dtype=jnp.bfloat16):
    """x:[M,K] (bf16) @ w:[K,N] (bf16) + b:[N] (f32); optional GELU and optional
    fused LayerNorm(residual + result) epilogue.  K is kept whole (no k-loop)."""
    M, K = x.shape
    K2, N = w.shape
    assert K == K2
    fuse_ln = residual is not None

    tm = _pick_tile(M, TM_PREF, 8)
    tn = N if fuse_ln else _pick_tile(N, TN_PREF, 128)  # LN reduces over full N
    grid = (M // tm, N // tn)

    in_specs = [
        pl.BlockSpec((tm, K), lambda i, j: (i, 0)),
        pl.BlockSpec((K, tn), lambda i, j: (0, j)),
        pl.BlockSpec((1, tn), lambda i, j: (0, j)),
    ]
    args = [x, w, b.reshape(1, N)]
    if fuse_ln:
        in_specs += [
            pl.BlockSpec((tm, tn), lambda i, j: (i, j)),
            pl.BlockSpec((1, tn), lambda i, j: (0, j)),
            pl.BlockSpec((1, tn), lambda i, j: (0, j)),
        ]
        args += [residual, ln_gamma.reshape(1, N), ln_beta.reshape(1, N)]

    kern = functools.partial(_mm_kernel, activation=activation,
                             fuse_ln=fuse_ln, eps=eps)
    return pl.pallas_call(
        kern,
        out_shape=jax.ShapeDtypeStruct((M, N), out_dtype),
        grid_spec=pltpu.PrefetchScalarGridSpec(
            num_scalar_prefetch=0,
            grid=grid,
            in_specs=in_specs,
            out_specs=pl.BlockSpec((tm, tn), lambda i, j: (i, j)),
        ),
        compiler_params=pltpu.CompilerParams(
            dimension_semantics=("parallel", "parallel"),
            vmem_limit_bytes=VMEM_LIMIT_BYTES,
        ),
    )(*args)


# ---------------- embedding add + LayerNorm (fused) ----------------

def _emb_ln_kernel(tok_ref, pos_ref, typ_ref, g_ref, b_ref, o_ref, *, eps):
    x = (tok_ref[...].astype(jnp.float32)
         + pos_ref[...].astype(jnp.float32)
         + typ_ref[...].astype(jnp.float32))
    mu = jnp.mean(x, axis=-1, keepdims=True)
    ms = jnp.mean(x * x, axis=-1, keepdims=True)
    y = (x - mu) * jax.lax.rsqrt(ms - mu * mu + eps)
    o_ref[...] = (y * g_ref[...].astype(jnp.float32)
                  + b_ref[...].astype(jnp.float32)).astype(o_ref.dtype)


def emb_layernorm(tok, pos_emb, type_emb, gamma, beta, *, B, S, eps=1e-5,
                  out_dtype=jnp.bfloat16):
    """tok: gathered token embeddings [B*S, H] (bf16); pos_emb [P,H], type_emb [1,H]
    (bf16).  Adds pos/type in-kernel and applies LayerNorm."""
    M, H = tok.shape
    assert M == B * S
    ts = _pick_tile(S, 512, 8)
    spb = S // ts
    return pl.pallas_call(
        functools.partial(_emb_ln_kernel, eps=eps),
        out_shape=jax.ShapeDtypeStruct((M, H), out_dtype),
        grid_spec=pltpu.PrefetchScalarGridSpec(
            num_scalar_prefetch=0,
            grid=(B, spb),
            in_specs=[pl.BlockSpec((ts, H), lambda b, si: (b * spb + si, 0)),
                      pl.BlockSpec((ts, H), lambda b, si: (si, 0)),
                      pl.BlockSpec((1, H), lambda b, si: (0, 0)),
                      pl.BlockSpec((1, H), lambda b, si: (0, 0)),
                      pl.BlockSpec((1, H), lambda b, si: (0, 0))],
            out_specs=pl.BlockSpec((ts, H), lambda b, si: (b * spb + si, 0)),
        ),
        compiler_params=pltpu.CompilerParams(
            dimension_semantics=("parallel", "parallel"),
            vmem_limit_bytes=VMEM_LIMIT_BYTES,
        ),
    )(tok, pos_emb, type_emb, gamma.reshape(1, H), beta.reshape(1, H))


# ---------------- flash attention (streaming KV, fused additive mask) ----------------

def _flash_kernel(q_ref, k_ref, v_ref, m_ref, o_ref, m_sc, l_sc, acc_sc, *, kv_steps):
    ki = pl.program_id(2)

    @pl.when(ki == 0)
    def _init():
        m_sc[...] = jnp.full(m_sc.shape, -jnp.inf, jnp.float32)
        l_sc[...] = jnp.zeros(l_sc.shape, jnp.float32)
        acc_sc[...] = jnp.zeros(acc_sc.shape, jnp.float32)

    # scores in f32; the 1/sqrt(dh) scale is folded into the Q projection weights
    s = jax.lax.dot_general(q_ref[...], k_ref[...], (((1,), (1,)), ((), ())),
                            preferred_element_type=jnp.float32)
    s = s + m_ref[0]  # additive key-padding mask [1, tkv], broadcast over q rows

    m_prev = m_sc[...]
    m_new = jnp.maximum(m_prev, jnp.max(s, axis=-1, keepdims=True))
    alpha = jnp.exp(m_prev - m_new)
    p = jnp.exp(s - m_new)
    l_sc[...] = alpha * l_sc[...] + jnp.sum(p, axis=-1, keepdims=True)
    acc_sc[...] = alpha * acc_sc[...] + jnp.dot(
        p.astype(v_ref.dtype), v_ref[...], preferred_element_type=jnp.float32)
    m_sc[...] = m_new

    @pl.when(ki == kv_steps - 1)
    def _finalize():
        o_ref[...] = (acc_sc[...] *
                      pl.reciprocal(l_sc[...], approx=True)).astype(o_ref.dtype)


def flash_attention(qkv, add_mask, *, B, S, nh, dh_pad, out_dtype=jnp.bfloat16):
    """qkv: [B*S, 3*nh*dh_pad] bf16 (fused projection output, Q pre-scaled, each
    head padded to dh_pad lanes); add_mask: [B, 1, S] f32 additive (0 / -1e9).
    Returns context [B*S, nh*dh_pad]."""
    M, threeHp = qkv.shape
    Hp = nh * dh_pad
    assert threeHp == 3 * Hp and M == B * S
    assert dh_pad % 128 == 0  # heads are padded to lane-dense 128-wide blocks

    tq = _pick_tile(S, TQ_PREF, 8)
    tkv = _pick_tile(S, TKV_PREF, 128)
    q_blocks = S // tq
    kv_steps = S // tkv
    grid = (B * nh, q_blocks, kv_steps)

    def q_map(bh, qi, ki):
        return (bh // nh * q_blocks + qi, bh % nh)

    def k_map(bh, qi, ki):
        return (bh // nh * kv_steps + ki, nh + bh % nh)

    def v_map(bh, qi, ki):
        return (bh // nh * kv_steps + ki, 2 * nh + bh % nh)

    def mask_map(bh, qi, ki):
        return (bh // nh, 0, ki)

    def o_map(bh, qi, ki):
        return (bh // nh * q_blocks + qi, bh % nh)

    return pl.pallas_call(
        functools.partial(_flash_kernel, kv_steps=kv_steps),
        out_shape=jax.ShapeDtypeStruct((M, Hp), out_dtype),
        grid_spec=pltpu.PrefetchScalarGridSpec(
            num_scalar_prefetch=0,
            grid=grid,
            # qkv is passed three times: one input per Q/K/V BlockSpec slice.
            in_specs=[pl.BlockSpec((tq, dh_pad), q_map),
                      pl.BlockSpec((tkv, dh_pad), k_map),
                      pl.BlockSpec((tkv, dh_pad), v_map),
                      pl.BlockSpec((1, 1, tkv), mask_map)],
            out_specs=pl.BlockSpec((tq, dh_pad), o_map),
            scratch_shapes=[pltpu.VMEM((tq, 1), jnp.float32),
                            pltpu.VMEM((tq, 1), jnp.float32),
                            pltpu.VMEM((tq, dh_pad), jnp.float32)],
        ),
        compiler_params=pltpu.CompilerParams(
            dimension_semantics=("parallel", "parallel", "arbitrary"),
            vmem_limit_bytes=VMEM_LIMIT_BYTES,
        ),
    )(qkv, qkv, qkv, add_mask)


# ---------------- params / model glue ----------------

def init_params(key, cfg):
    H, F, V = cfg["hidden"], cfg["ffn"], cfg["vocab"]
    P, NC, L = cfg["max_pos"], cfg["num_classes"], cfg["layers"]
    keys = jax.random.split(key, 4 + L)

    def nrm(k, shape):
        return jax.random.normal(k, shape, jnp.float32) * 0.02

    params = {
        "tok_emb": nrm(keys[0], (V, H)),
        "pos_emb": nrm(keys[1], (P, H)),
        "type_emb": nrm(keys[2], (1, H)),
        "emb_ln_g": jnp.ones((H,), jnp.float32),
        "emb_ln_b": jnp.zeros((H,), jnp.float32),
        "cls_w": nrm(keys[3], (H, NC)),
        "cls_b": jnp.zeros((NC,), jnp.float32),
        "layers": [],
    }
    for i in range(L):
        lk = jax.random.split(keys[4 + i], 6)
        params["layers"].append({
            "wq": nrm(lk[0], (H, H)), "bq": jnp.zeros((H,), jnp.float32),
            "wk": nrm(lk[1], (H, H)), "bk": jnp.zeros((H,), jnp.float32),
            "wv": nrm(lk[2], (H, H)), "bv": jnp.zeros((H,), jnp.float32),
            "wo": nrm(lk[3], (H, H)), "bo": jnp.zeros((H,), jnp.float32),
            "ln1_g": jnp.ones((H,), jnp.float32), "ln1_b": jnp.zeros((H,), jnp.float32),
            "w1": nrm(lk[4], (H, F)), "b1": jnp.zeros((F,), jnp.float32),
            "w2": nrm(lk[5], (F, H)), "b2": jnp.zeros((H,), jnp.float32),
            "ln2_g": jnp.ones((H,), jnp.float32), "ln2_b": jnp.zeros((H,), jnp.float32),
        })
    return params


def prepare_fast_params(params, cfg):
    """bf16 weights/embeddings for the MXU, fused [H, 3*nh*dh_pad] QKV (scale folded
    into Q, each head zero-padded to 128 lanes so dh=64 works), wo with matching
    zero rows, classifier padded to a 256-lane output."""
    H, nh, NC = cfg["hidden"], cfg["heads"], cfg["num_classes"]
    dh = H // nh
    scale = 1.0 / math.sqrt(dh)
    dh_pad = dh if dh % 128 == 0 else ((dh + 127) // 128) * 128
    Hp = nh * dh_pad
    NC_pad = max(256, ((NC + 255) // 256) * 256)

    def pad_head_cols(w):   # [H, H] -> [H, Hp]
        w = w.reshape(H, nh, dh)
        if dh_pad != dh:
            w = jnp.pad(w, ((0, 0), (0, 0), (0, dh_pad - dh)))
        return w.reshape(H, Hp)

    def pad_head_vec(b):    # [H] -> [Hp]
        b = b.reshape(nh, dh)
        if dh_pad != dh:
            b = jnp.pad(b, ((0, 0), (0, dh_pad - dh)))
        return b.reshape(Hp)

    def pad_head_rows(w):   # [H, H] -> [Hp, H]
        w = w.reshape(nh, dh, H)
        if dh_pad != dh:
            w = jnp.pad(w, ((0, 0), (0, dh_pad - dh), (0, 0)))
        return w.reshape(Hp, H)

    fast = {
        "dh_pad": dh_pad,
        "tok_emb": params["tok_emb"].astype(jnp.bfloat16),
        "pos_emb": params["pos_emb"].astype(jnp.bfloat16),
        "type_emb": params["type_emb"].astype(jnp.bfloat16),
        "emb_ln_g": params["emb_ln_g"],
        "emb_ln_b": params["emb_ln_b"],
        "cls_w": jnp.zeros((H, NC_pad), jnp.bfloat16).at[:, :NC].set(
            params["cls_w"].astype(jnp.bfloat16)),
        "cls_b": jnp.zeros((NC_pad,), jnp.float32).at[:NC].set(params["cls_b"]),
        "layers": [],
    }
    for lyr in params["layers"]:
        wqkv = jnp.concatenate([pad_head_cols(lyr["wq"] * scale),
                                pad_head_cols(lyr["wk"]),
                                pad_head_cols(lyr["wv"])], axis=1).astype(jnp.bfloat16)
        bqkv = jnp.concatenate([pad_head_vec(lyr["bq"] * scale),
                                pad_head_vec(lyr["bk"]),
                                pad_head_vec(lyr["bv"])])
        fast["layers"].append({
            "wqkv": wqkv, "bqkv": bqkv,
            "wo": pad_head_rows(lyr["wo"]).astype(jnp.bfloat16), "bo": lyr["bo"],
            "ln1_g": lyr["ln1_g"], "ln1_b": lyr["ln1_b"],
            "w1": lyr["w1"].astype(jnp.bfloat16), "b1": lyr["b1"],
            "w2": lyr["w2"].astype(jnp.bfloat16), "b2": lyr["b2"],
            "ln2_g": lyr["ln2_g"], "ln2_b": lyr["ln2_b"],
        })
    return fast


def vanilla_xlm_forward(fast, input_ids, attention_mask, cfg):
    B, S = input_ids.shape
    H, nh, NC = cfg["hidden"], cfg["heads"], cfg["num_classes"]
    dh_pad = fast["dh_pad"]

    # ---- embeddings: token gather (JAX glue), pos/type add + LN fused in-kernel ----
    # TODO(synk): HF XLM-R derives position ids from the mask with a padding_idx
    # offset; plain arange(S) positions are used here.
    tok = fast["tok_emb"][input_ids.reshape(-1)]                 # [B*S, H] bf16
    h = emb_layernorm(tok, fast["pos_emb"], fast["type_emb"],
                      fast["emb_ln_g"], fast["emb_ln_b"], B=B, S=S)

    # one additive key-padding mask copy; heads broadcast via index_map
    add_mask = ((1.0 - attention_mask.astype(jnp.float32)) * -1e9)[:, None, :]

    # ---- encoder layers ----
    for lyr in fast["layers"]:
        qkv = fused_matmul(h, lyr["wqkv"], lyr["bqkv"])                      # [M, 3*Hp]
        ctx = flash_attention(qkv, add_mask, B=B, S=S, nh=nh, dh_pad=dh_pad)  # [M, Hp]
        h = fused_matmul(ctx, lyr["wo"], lyr["bo"],
                         residual=h, ln_gamma=lyr["ln1_g"], ln_beta=lyr["ln1_b"])
        ff = fused_matmul(h, lyr["w1"], lyr["b1"], activation="gelu")
        h = fused_matmul(ff, lyr["w2"], lyr["b2"],
                         residual=h, ln_gamma=lyr["ln2_g"], ln_beta=lyr["ln2_b"])

    # ---- classifier head (nn.Linear of VanillaXLMBase), lane-padded to 256 ----
    logits = fused_matmul(h, fast["cls_w"], fast["cls_b"], out_dtype=jnp.float32)
    return logits[:, :NC].reshape(B, S, NC)


if __name__ == "__main__":
    # toy config with the real model's head_dim=64 (heads padded to 128 lanes internally)
    cfg = dict(vocab=100, hidden=256, heads=4, layers=2, ffn=512,
               max_pos=64, num_classes=3)
    key = jax.random.PRNGKey(0)
    pkey, ikey = jax.random.split(key)
    params = init_params(pkey, cfg)
    fast = prepare_fast_params(params, cfg)

    B, S = 2, 8
    input_ids = jax.random.randint(ikey, (B, S), 0, cfg["vocab"], dtype=jnp.int32)
    attention_mask = jnp.array([[1, 1, 1, 1, 1, 1, 1, 1],
                                [1, 1, 1, 1, 1, 1, 0, 0]], dtype=jnp.int32)

    out = vanilla_xlm_forward(fast, input_ids, attention_mask, cfg)
    jax.block_until_ready(out)
    assert out.shape == (B, S, cfg["num_classes"])
    assert bool(jnp.all(jnp.isfinite(out)))
    print("KERNEL_OK")
</pallas_src>

<mosaic_0001>
module attributes {stable_mosaic.version = 11 : i64} {
  func.func @_emb_ln_kernel(%arg0: i32, %arg1: i32, %arg2: memref<8x256xbf16, #tpu.memory_space<vmem>>, %arg3: memref<8x256xbf16, #tpu.memory_space<vmem>>, %arg4: memref<1x256xbf16, #tpu.memory_space<vmem>>, %arg5: memref<1x256xf32, #tpu.memory_space<vmem>>, %arg6: memref<1x256xf32, #tpu.memory_space<vmem>>, %arg7: memref<8x256xbf16, #tpu.memory_space<vmem>>) attributes {dimension_semantics = [#tpu.dimension_semantics<parallel>, #tpu.dimension_semantics<parallel>], iteration_bounds = array<i64: 2, 1>, scalar_prefetch = 0 : i64, scratch_operands = 0 : i64, tpu.core_type = #tpu.core_type<tc>, window_params = [{transform_indices = @transform_0, window_bounds = array<i64: 8, 256>}, {transform_indices = @transform_1, window_bounds = array<i64: 8, 256>}, {pipeline_mode = #tpu.pipeline_mode<synchronous>, transform_indices = @transform_2, window_bounds = array<i64: 1, 256>}, {pipeline_mode = #tpu.pipeline_mode<synchronous>, transform_indices = @transform_3, window_bounds = array<i64: 1, 256>}, {pipeline_mode = #tpu.pipeline_mode<synchronous>, transform_indices = @transform_4, window_bounds = array<i64: 1, 256>}, {transform_indices = @transform_5, window_bounds = array<i64: 8, 256>}]} {
    %c0 = arith.constant 0 : index
    %c0_0 = arith.constant 0 : index
    %0 = vector.load %arg2[%c0, %c0_0] : memref<8x256xbf16, #tpu.memory_space<vmem>>, vector<8x256xbf16>
    %1 = arith.extf %0 : vector<8x256xbf16> to vector<8x256xf32>
    %c0_1 = arith.constant 0 : index
    %c0_2 = arith.constant 0 : index
    %2 = vector.load %arg3[%c0_1, %c0_2] : memref<8x256xbf16, #tpu.memory_space<vmem>>, vector<8x256xbf16>
    %3 = arith.extf %2 : vector<8x256xbf16> to vector<8x256xf32>
    %4 = arith.addf %1, %3 : vector<8x256xf32>
    %c0_3 = arith.constant 0 : index
    %c0_4 = arith.constant 0 : index
    %5 = vector.load %arg4[%c0_3, %c0_4] : memref<1x256xbf16, #tpu.memory_space<vmem>>, vector<1x256xbf16>
    %6 = arith.extf %5 : vector<1x256xbf16> to vector<1x256xf32>
    %7 = vector.broadcast %6 : vector<1x256xf32> to vector<8x256xf32>
    %8 = arith.addf %4, %7 : vector<8x256xf32>
    %cst = arith.constant dense<0.000000e+00> : vector<8xf32>
    %9 = vector.multi_reduction <add>, %8, %cst [1] : vector<8x256xf32> to vector<8xf32>
    %10 = vector.shape_cast %9 : vector<8xf32> to vector<8x1xf32>
    %cst_5 = arith.constant 2.560000e+02 : f32
    %11 = vector.broadcast %cst_5 : f32 to vector<8x1xf32>
    %12 = arith.divf %10, %11 : vector<8x1xf32>
    %13 = arith.mulf %8, %8 : vector<8x256xf32>
    %cst_6 = arith.constant dense<0.000000e+00> : vector<8xf32>
    %14 = vector.multi_reduction <add>, %13, %cst_6 [1] : vector<8x256xf32> to vector<8xf32>
    %15 = vector.shape_cast %14 : vector<8xf32> to vector<8x1xf32>
    %cst_7 = arith.constant 2.560000e+02 : f32
    %16 = vector.broadcast %cst_7 : f32 to vector<8x1xf32>
    %17 = arith.divf %15, %16 : vector<8x1xf32>
    %18 = vector.broadcast %12 : vector<8x1xf32> to vector<8x256xf32>
    %19 = arith.subf %8, %18 : vector<8x256xf32>
    %20 = arith.mulf %12, %12 : vector<8x1xf32>
    %21 = arith.subf %17, %20 : vector<8x1xf32>
    %cst_8 = arith.constant 9.99999974E-6 : f32
    %22 = vector.broadcast %cst_8 : f32 to vector<8x1xf32>
    %23 = arith.addf %21, %22 : vector<8x1xf32>
    %24 = math.rsqrt %23 : vector<8x1xf32>
    %25 = vector.broadcast %24 : vector<8x1xf32> to vector<8x256xf32>
    %26 = arith.mulf %19, %25 : vector<8x256xf32>
    %c0_9 = arith.constant 0 : index
    %c0_10 = arith.constant 0 : index
    %27 = vector.load %arg5[%c0_9, %c0_10] : memref<1x256xf32, #tpu.memory_space<vmem>>, vector<1x256xf32>
    %28 = vector.broadcast %27 : vector<1x256xf32> to vector<8x256xf32>
    %29 = arith.mulf %26, %28 : vector<8x256xf32>
    %c0_11 = arith.constant 0 : index
    %c0_12 = arith.constant 0 : index
    %30 = vector.load %arg6[%c0_11, %c0_12] : memref<1x256xf32, #tpu.memory_space<vmem>>, vector<1x256xf32>
    %31 = vector.broadcast %30 : vector<1x256xf32> to vector<8x256xf32>
    %32 = arith.addf %29, %31 : vector<8x256xf32>
    %33 = arith.truncf %32 : vector<8x256xf32> to vector<8x256xbf16>
    %c0_13 = arith.constant 0 : index
    %c0_14 = arith.constant 0 : index
    %34 = vector.load %arg7[%c0_13, %c0_14] : memref<8x256xbf16, #tpu.memory_space<vmem>>, vector<8x256xbf16>
    tpu.vector_store %arg7[%c0_13, %c0_14], %33 {strides = array<i32>} : memref<8x256xbf16, #tpu.memory_space<vmem>>, vector<8x256xbf16>,
    return
  }
  func.func @transform_0(%arg0: i32, %arg1: i32) -> (i32, i32) {
    %c1_i32 = arith.constant 1 : i32
    %0 = arith.muli %arg0, %c1_i32 : i32
    %1 = arith.addi %0, %arg1 : i32
    %c0_i32 = arith.constant 0 : i32
    %c0_i32_0 = arith.constant 0 : i32
    return %1, %c0_i32 : i32, i32
  }
  func.func @transform_1(%arg0: i32, %arg1: i32) -> (i32, i32) {
    %c0_i32 = arith.constant 0 : i32
    %c0_i32_0 = arith.constant 0 : i32
    return %arg1, %c0_i32 : i32, i32
  }
  func.func @transform_2(%arg0: i32, %arg1: i32) -> (i32, i32) {
    %c0_i32 = arith.constant 0 : i32
    %c0_i32_0 = arith.constant 0 : i32
    %c0_i32_1 = arith.constant 0 : i32
    return %c0_i32, %c0_i32_0 : i32, i32
  }
  func.func @transform_3(%arg0: i32, %arg1: i32) -> (i32, i32) {
    %c0_i32 = arith.constant 0 : i32
    %c0_i32_0 = arith.constant 0 : i32
    %c0_i32_1 = arith.constant 0 : i32
    return %c0_i32, %c0_i32_0 : i32, i32
  }
  func.func @transform_4(%arg0: i32, %arg1: i32) -> (i32, i32) {
    %c0_i32 = arith.constant 0 : i32
    %c0_i32_0 = arith.constant 0 : i32
    %c0_i32_1 = arith.constant 0 : i32
    return %c0_i32, %c0_i32_0 : i32, i32
  }
  func.func @transform_5(%arg0: i32, %arg1: i32) -> (i32, i32) {
    %c1_i32 = arith.constant 1 : i32
    %0 = arith.muli %arg0, %c1_i32 : i32
    %1 = arith.addi %0, %arg1 : i32
    %c0_i32 = arith.constant 0 : i32
    %c0_i32_0 = arith.constant 0 : i32
    return %1, %c0_i32 : i32, i32
  }
}

</mosaic_0001>

<bundles_post_ra>
// kernel: tpu_custom_call.1
= control target key start
LH: loop header
LB: loop body
LE: loop exit
PB: predicated region body
PF: predicated region fallthrough
CT: control target
= control target key end

     0   :  { %s919_s0 = inlined_call_operand.hbm [shape: bf16[16,256], index: 0, kind: input, shape index: {}]   ;;  %s920_s1 = inlined_call_operand.hbm [shape: bf16[64,256], index: 1, kind: input, shape index: {}]   ;;  %s921_s2 = inlined_call_operand.vmem [shape: bf16[1,256], index: 2, kind: input, shape index: {}]   ;;  %s922_s3 = inlined_call_operand.vmem [shape: f32[1,256], index: 3, kind: input, shape index: {}]   ;;  %s923_s4 = inlined_call_operand.vmem [shape: f32[1,256], index: 4, kind: input, shape index: {}]   ;;  %s924_s5 = inlined_call_operand.hbm [shape: bf16[16,256], index: 5, kind: output, shape index: {}]  }
   0x1   :  { %926 = sst [smem:[#allocation11_spill]] %s920_s1 }
   0x2   :  { %10 = vsyncpa [#allocation3], 0 }
   0x3   :  { %12 = vsyncpa [#allocation3 + $0x1], 0 }
   0x4   :  { %13 = vsyncpa [#allocation6], 0 }
   0x5   :  { %14 = vsyncpa [#allocation4], 0 }
   0x6   :  { %16 = vsyncpa [#allocation4 + $0x1], 0  ;;  %s745_s18 = smov 0   ;;  %s747_s19 = smov 0  }
   0x7   :  { %s749_s20 = smov 0   ;;  %s751_s21 = smov 0  }
   0x8   :  { %s753_s22 = smov 0   ;;  %s755_s23 = smov 0  }
   0x9 LB: > { %s476_s24 = sadd.s32 4294967295, %s710_s23   ;;  %s477_s25 = sadd.s32 4294967294, %s710_s23   ;;  %s710_s23 = sphi %s755_s23, %s22_s23   ;;  %s706_s22 = sphi %s753_s22, %s943_s22   ;;  %s702_s21 = sphi %s751_s21, %s942_s21   ;;  %s698_s20 = sphi %s749_s20, %s941_s20   ;;  %s694_s19 = sphi %s747_s19, %s940_s19   ;;  %s690_s18 = sphi %s745_s18, %s939_s18  }
   0xa   : > { %p56_p0 = scmp.ne.s32.totalorder %s694_s19, %s690_s18  ;;  %p779_p1 = scmp.eq.s32.totalorder %s476_s24, 0 }
   0xb   : > { %p783_p2 = scmp.eq.s32.totalorder %s476_s24, 1  ;;  %p177_p3 = scmp.eq.s32.totalorder %s477_s25, 1 }
   0xc   : > { %p789_p4 = por %p779_p1, %p56_p0  ;;  %p478_p5 = scmp.ge.s32.totalorder %s710_s23, 1 }
   0xd   : > { %p794_p6 = por %p177_p3, %p56_p0  ;;  %p184_p7 = scmp.lt.s32.totalorder %s710_s23, 3 }
   0xe   : > { %s929_s28 = scalar_select %p789_p4, 1, 0 }
   0xf   : > { %s930_s29 = scalar_select %p794_p6, 1, 0 }
  0x10   : > { %p799_p8 = pnand %p478_p5, %p184_p7  ;;  %s712_s6 = smov [#allocation5]  }
  0x11   : > { %s200_s7 = sshll.u32 %s712_s6, 4  ;;  %s34_s9 = sadd.s32 1, %s706_s22  ;;  %s201_s7 = int_to_ptr.vmem [resolvable:$true] %s200_s7 }
  0x12   : > { %p505_p10 = pneg %p799_p8  ;;  %s43_s10 = sadd.s32 1, %s698_s20 }
  0x13   : > { %p36_p12 = scmp.ge.s32.totalorder %s34_s9, 2  ;;  %s583_s11 = scalar_lea.vmem %s201_s7, 128 }
  0x14   : > { %p808_p11 = pnand %p505_p10, %p779_p1  ;;  %p584_p0 = scmp.ne.s32.totalorder %s201_s7, %s583_s11 }
  0x15   : > { %p591_p7 = scmp.lt.s32.totalorder %s201_s7, %s201_s7  ;;  %p592_p6 = scmp.lt.s32.totalorder %s583_s11, %s583_s11 }
  0x16   : > { %p574_p13 = pneg %p808_p11 }
  0x17   : > { %p593_p9 = por %p592_p6, %p591_p7 }
  0x18   : > { %p586_p3 = pnand %p584_p0, %p574_p13 }
  0x1a   : > { %p587_p5 = pneg %p586_p3 }
  0x1c   : > { %p594_p4 = pnand %p593_p9, %p587_p5 }
  0x1e   : > { %597 = shalt.err (!%p594_p4)
}
  0x1f   : > { %s933_s1 = sld [smem:[#allocation11_spill]]  ;;  %s945_s9 = smov (%p36_p12, %s34_s9), 0 }
  0x20   : > { %p50_p6 = scmp.ne.s32.totalorder %s698_s20, %s694_s19  ;;  %p51_p4 = scmp.eq.s32.totalorder %s710_s23, 0 }
  0x21   : > { %s40_s14 = ssub.s32 %s706_s22, %s945_s9  ;;  %p518_p9 = scmp.lt.s32.totalorder %s710_s23, 2 }
  0x22   : > { %p41_p10 = scmp.eq.s32.totalorder %s40_s14, 0  ;;  %p52_p13 = por %p51_p4, %p50_p6 }
  0x23   : > { %p831_p0 = por %p783_p2, %p50_p6  ;;  %s220_s16 = sand.u32 1, %s698_s20  }
  0x24   : > { %s837_s17 = scalar_select %p41_p10, %s698_s20, %s43_s10  }
  0x25   : > { %508 = dma.hbm_to_vmem [thread:$0]  (!%p808_p11), %s933_s1, 128, %s201_s7, [#allocation6]  }
  0x26   : > { %s481_s24 = sshll.u32 %s220_s16, 3  ;;  %s494_s25 = sshll.u32 %s706_s22, 7 }
  0x27   : > { %s231_s8 = scalar_lea.hbm %s919_s0, %s494_s25  ;;  %s224_s11 = scalar_lea.vmem [#allocation2], %s481_s24 }
  0x28   : > { %s233_s12 = sshll.u32 %s224_s11, 4  ;;  %p843_p11 = pnand %p518_p9, %p52_p13  ;;  %s234_s12 = int_to_ptr.vmem [resolvable:$true] %s233_s12 }
  0x29   : > { %s221_s27 = scalar_lea.sflag [#allocation3], %s220_s16  ;;  %s611_s14 = scalar_lea.vmem %s234_s12, 128 }
  0x2a   : > { %p600_p2 = pneg %p843_p11  ;;  %p612_p12 = scmp.ne.s32.totalorder %s234_s12, %s611_s14 }
  0x2b   : > { %s713_s10 = smov [#allocation2]  }
  0x2c   : > { %p614_p3 = pnand %p612_p12, %p600_p2  ;;  %s616_s1 = sshll.u32 %s713_s10, 4  ;;  %s617_s1 = int_to_ptr.vmem [resolvable:$false] %s616_s1 }
  0x2d   : > { %s618_s6 = scalar_lea.vmem %s617_s1, 256  ;;  %p619_p7 = scmp.lt.s32.totalorder %s234_s12, %s617_s1 }
  0x2e   : > { %p615_p5 = pneg %p614_p3  ;;  %p620_p6 = scmp.lt.s32.totalorder %s618_s6, %s611_s14 }
  0x30   : > { %p621_p4 = por %p620_p6, %p619_p7 }
  0x32   : > { %p622_p10 = pnand %p621_p4, %p615_p5 }
  0x34   : > { %625 = shalt.err (!%p622_p10)
}
  0x35   : > { %512 = dma.hbm_to_vmem [thread:$0]  (!%p843_p11), %s231_s8, 128, %s234_s12, %s221_s27  }
  0x36   : > { %242 = sbr.rel (%p799_p8) target bundleno = 259 (0x103), region = 40  ;;  %s854_s16 = sand.u32 (!%p799_p8), 1, %s694_s19  }
  0x37   : > { %s485_s24 = sshll.u32 (!%p799_p8), %s854_s16, 3  ;;  %s245_s25 = scalar_lea.sflag (!%p799_p8), [#allocation3], %s854_s16 }
  0x38   : > { %s248_s1 = scalar_lea.vmem (!%p799_p8), [#allocation2], %s485_s24  ;;  %p936_p9 = scmp.ne.s32.totalorder (!%p799_p8), %s929_s28, 0 }
  0x3b   : > { %677 = dma.done.wait (%p936_p9), %s245_s25, 128  }
  0x3c   : > { %679 = vsyncadd (%p936_p9), %s245_s25, 4294967168 }
  0x3d   : > { %681 = dma.done.wait (%p779_p1), [#allocation6], 128  }
  0x3e   : > { %683 = vsyncadd (%p779_p1), [#allocation6], 4294967168  ;;  %v292_v0 = vlaneseq  ;;  %v281_v2 = vld [vmem:[%s248_s1] sm:$0xff]  ;;  %v284_v3 = vld [vmem:[#allocation5] sm:$0xff]  ;;  %s496_s12 = sshll.u32 %s702_s21, 7  ;;  %s278_s13 = scalar_lea.vmem [#allocation7], %s485_s24 }
  0x3f   : > { %v289_v4 = vld [vmem:[%s921_s2] sm:$0x3]  ;;  %v282_v7 = vunpack.c.l.bf16 %v281_v2  ;;  %v283_v8 = vunpack.c.h.bf16 %v281_v2  ;;  %v285_v9 = vunpack.c.l.bf16 %v284_v3  ;;  %v286_v10 = vunpack.c.h.bf16 %v284_v3  ;;  %s384_s27 = sshll.u32 %s278_s13, 4  ;;  %s382_s6 = scalar_lea.hbm %s924_s5, %s496_s12  ;;  %s385_s27 = int_to_ptr.vmem [resolvable:$true] %s384_s27 }
  0x40   : > { %v293_v1 = vshrl.u32 %v292_v0, 7  ;;  %v290_v11 = vunpack.c.l.bf16 %v289_v4  ;;  %v331_v32 = vld [vmem:[%s922_s3] sm:$0x3]  ;;  %s369_s25 = scalar_lea.sflag [#allocation4], %s854_s16  ;;  %s626_s1 = scalar_lea.vmem %s385_s27, 128 }
  0x41   : > { %v287_v12 = vadd.f32 %v285_v9, %v282_v7  ;;  %v288_v13 = vadd.f32 %v286_v10, %v283_v8  ;;  %v345_v33 = vld [vmem:[%s923_s4] sm:$0x3]  ;;  %p627_p1 = scmp.ne.s32.totalorder %s385_s27, %s626_s1  ;;  %s714_s30 = smov [#allocation7]  }
  0x42   : > { %v294_v5 = vsub.s32 0, %v293_v1  ;;  %v298_v6 = vsub.s32 2, %v293_v1  ;;  %v339_v31 = vsub.s32 1, %v293_v1  ;;  %s630_s21 = sshll.u32 %s714_s30, 4  ;;  %s631_s21 = int_to_ptr.vmem [resolvable:$false] %s630_s21 }
  0x43   : > { %p628_p8 = pnand %p627_p1, %p831_p0  ;;  %s632_s24 = scalar_lea.vmem %s631_s21, 256 }
  0x44   : > { %v295_v14 = vrot.slane %v290_v11, %v294_v5  ;;  %v299_v15 = vrot.slane %v290_v11, %v298_v6  ;;  %v336_v36 = vrot.slane %v331_v32, %v294_v5  ;;  %v340_v37 = vrot.slane %v331_v32, %v339_v31  ;;  %p633_p11 = scmp.lt.s32.totalorder %s385_s27, %s631_s21  ;;  %p634_p2 = scmp.lt.s32.totalorder %s632_s24, %s626_s1 }
  0x45   : > { %v350_v41 = vrot.slane %v345_v33, %v294_v5  ;;  %v354_v42 = vrot.slane %v345_v33, %v339_v31  ;;  %p629_p13 = pneg %p628_p8 }
  0x46   : > { %v305_v16 = vrot.slane %v295_v14, %v294_v5  ;;  %v309_v17 = vrot.slane %v299_v15, %v294_v5  ;;  %p635_p12 = por %p634_p2, %p633_p11 }
  0x48   : > { %v310_v18 = vadd.f32 %v305_v16, %v287_v12  ;;  %v311_v19 = vadd.f32 %v309_v17, %v288_v13  ;;  %p636_p3 = pnand %p635_p12, %p629_p13 }
  0x4a   : > { %v312_v20 = vadd.f32 %v311_v19, %v310_v18  ;;  %v317_v21 = vmul.f32 %v310_v18, %v310_v18  ;;  %v318_v22 = vmul.f32 %v311_v19, %v311_v19 }
  0x4c   : > { %313 = vadd.xlane.f32.xlu0 %v312_v20  ;;  %v319_v23 = vadd.f32 %v318_v22, %v317_v21 }
  0x50   : > { %320 = vadd.xlane.f32.xlu0 %v319_v23 }
  0xd5   : > { %v314_v24 = vpop.xlane.xlu0 %313 }
  0xd6   : > { %v316_v25 = vmul.f32 0.00390625, %v314_v24 }
  0xd8   : > { %v325_v27 = vmul.f32 %v316_v25, %v316_v25  ;;  %v323_v34 = vsub.f32 %v310_v18, %v316_v25  ;;  %v324_v35 = vsub.f32 %v311_v19, %v316_v25 }
  0xd9   : > { %v321_v26 = vpop.xlane.xlu0 %320 }
  0xda   : > { %v322_v28 = vmul.f32 0.00390625, %v321_v26 }
  0xdc   : > { %v326_v29 = vsub.f32 %v322_v28, %v325_v27 }
  0xde   : > { %v327_v30 = vadd.f32 1e-05, %v326_v29 }
  0xe0   : > { %570 = vrsqrt.f32 %v327_v30 }
  0xed   : > { %v571_v38 = vpop.eup %570 }
  0xee   : > { %v329_v39 = vmul.f32 %v571_v38, %v323_v34  ;;  %v330_v40 = vmul.f32 %v571_v38, %v324_v35 }
  0xf0   : > { %v343_v43 = vmul.f32 %v336_v36, %v329_v39  ;;  %v344_v44 = vmul.f32 %v340_v37, %v330_v40 }
  0xf2   : > { %v357_v45 = vadd.f32 %v350_v41, %v343_v43  ;;  %v358_v46 = vadd.f32 %v354_v42, %v344_v44 }
  0xf4   : > { %v495_v47 = vpack.c.bf16 %v358_v46, %v357_v45 }
  0xf6   : > { %367 = vst [vmem:[%s278_s13] sm:$0xff] %v495_v47 }
  0xf7   : > { %639 = shalt.err (!%p636_p3)
}
  0xf8   : > { %s640_s7 = scalar_lea.hbm %s382_s6, 128  ;;  %s644_s28 = scalar_lea.hbm %s924_s5, 256 }
  0xf9   : > { %p641_p5 = scmp.ne.s32.totalorder %s382_s6, %s640_s7  ;;  %p645_p4 = scmp.lt.s32.totalorder %s382_s6, %s924_s5 }
  0xfa   : > { %p646_p10 = scmp.lt.s32.totalorder %s644_s28, %s640_s7 }
  0xfb   : > { %p642_p7 = pnand %p641_p5, %p831_p0 }
  0xfc   : > { %p647_p9 = por %p646_p10, %p645_p4 }
  0xfd   : > { %p643_p6 = pneg %p642_p7 }
  0xff   : > { %p648_p1 = pnand %p647_p9, %p643_p6 }
 0x101   : > { %651 = shalt.err (!%p648_p1)
}
 0x102   : > { %503 = dma.vmem_to_hbm [thread:$0]  (%p831_p0), %s385_s27, 128, %s382_s6, %s369_s25  }
 0x103 PF: > { %s396_s12 = sand.u32 1, %s690_s18   ;;  %p937_p8 = scmp.ne.s32.totalorder %s930_s29, 0 }
 0x104   : > { %p938_p13 = scmp.ge.s32.totalorder %s710_s23, 2  ;;  %s397_s13 = scalar_lea.sflag [#allocation4], %s396_s12 }
 0x106   : > { %p514_p11 = pnand %p938_p13, %p937_p8 }
 0x108   : > { %p515_p2 = pneg %p514_p11 }
 0x10a   : > { %685 = dma.done.wait (%p515_p2), %s397_s13, 128  }
 0x10b   : > { %687 = vsyncadd (%p515_p2), %s397_s13, 4294967168  ;;  %s22_s23 = sadd.s32 1, %s710_s23   ;;  %s939_s18 = smov %s694_s19 }
 0x10c   : > { %p19_p12 = scmp.ge.s32.totalorder %s22_s23, 4   ;;  %s940_s19 = smov %s698_s20 }
 0x10d   : > { %s941_s20 = smov %s837_s17  ;;  %s942_s21 = smov %s706_s22 }
 0x10e   : > { %s943_s22 = smov %s945_s9  ;;  %21 = sbr.rel (!%p19_p12) target bundleno = 9 (0x9), region = 90 }
 0x113   :  { %402 = vsyncpa [#allocation3], 1 }
 0x114   :  { %404 = vsyncpa [#allocation3 + $0x1], 1 }
 0x115   :  { %405 = vsyncpa [#allocation6], 1 }
 0x116   :  { %406 = vsyncpa [#allocation4], 1 }
 0x117   :  { %408 = vsyncpa [#allocation4 + $0x1], 1 }

</bundles_post_ra>
